<compile_context>
chip_gen: v6e
topology: v6e:2x2x1
jax: 0.10.0
libtpu: 0.0.40
codegen_flags: <defaults>
</compile_context>

<pallas_src>
import functools

import jax
import jax.numpy as jnp
import numpy as np
from jax.experimental import pallas as pl
from jax.experimental.pallas import tpu as pltpu

STEM_CH = 32
NUM_FEATURES = 1280
BN_EPS_BACKBONE = 1e-3   # timm tf_* BatchNormAct2d eps
BN_EPS_HEAD = 1e-5       # nn.BatchNorm2d default eps

# Per-call working sets here stay <= ~8 MiB, so this cap is safe on v5e/v6e (128 MiB physical)
# and on v7x (64 MiB physical) while allowing larger tiles than the 32 MiB scoped default.
_VMEM_LIMIT = 64 * 1024 * 1024
# v6e/v7x MXU passes are 256 wide -> prefer 512/256; 640 catches N=1280 without LHS re-streaming;
# 384 kept only as a last resort before 128 (e.g. 1152).
_TN_CAND = (512, 640, 256, 384, 128)
_TK_CAND = (512, 256, 384, 128)

# tf_efficientnetv2_b0 block config: (type, repeats, kernel, stride, expand, out_ch, se_ratio)
V2_B0_CFG = [
    ("cn", 1, 3, 1, 1, 16, 0.0),
    ("er", 2, 3, 2, 4, 32, 0.0),
    ("er", 2, 3, 2, 4, 48, 0.0),
    ("ir", 3, 3, 2, 4, 96, 0.25),
    ("ir", 5, 3, 1, 6, 112, 0.25),
    ("ir", 8, 3, 2, 6, 192, 0.25),
]


# --------------------------------------------------------------------------------------
# Small helpers
# --------------------------------------------------------------------------------------
def _round_up(v, m):
    return ((v + m - 1) // m) * m


def _pick_div(dim, cands):
    for c in cands:
        if dim % c == 0:
            return c
    return None


def _pad_ch(c):
    """Pad an inter-layer channel count to a multiple of 128 only when the relative overhead is
    <= 20% (lane-dense stores are not worth +33% MXU work on the 96/192-ch layers)."""
    if c % 128 == 0:
        return c
    p = _round_up(c, 128)
    if c >= 96 and (p - c) <= 0.20 * c:
        return p
    return c


def _pad_to(a, shape):
    return jnp.pad(a, [(0, t - s) for s, t in zip(a.shape, shape)])


def _apply_act(y, act):
    if act == "silu":
        return y * jax.nn.sigmoid(y)
    if act == "relu":
        return jnp.maximum(y, 0.0)
    if act == "sigmoid":
        return jax.nn.sigmoid(y)
    return y  # "none"


# --------------------------------------------------------------------------------------
# Pallas kernels (with lru_cached builders so identical blocks reuse compiled kernels)
# --------------------------------------------------------------------------------------
def _mm_kernel(*refs, act, has_skip):
    """Tiled matmul: o = act((x @ w) * scale + bias) [+ skip]; K innermost; f32 scratch acc."""
    if has_skip:
        x_ref, w_ref, s_ref, b_ref, skip_ref, o_ref, acc_ref = refs
    else:
        x_ref, w_ref, s_ref, b_ref, o_ref, acc_ref = refs
        skip_ref = None
    kk = pl.program_id(2)

    @pl.when(kk == 0)
    def _():
        acc_ref[...] = jnp.zeros_like(acc_ref)

    acc_ref[...] += jnp.dot(x_ref[...], w_ref[...], preferred_element_type=jnp.float32)

    @pl.when(kk == pl.num_programs(2) - 1)
    def _():
        y = _apply_act(acc_ref[...] * s_ref[...] + b_ref[...], act)
        if has_skip:
            y = y + skip_ref[...].astype(jnp.float32)
        o_ref[...] = y.astype(o_ref.dtype)


@functools.lru_cache(maxsize=None)
def _build_mm(mp, kp, n, tm, tn, tk, act, has_skip, out_dtype):
    in_specs = [
        pl.BlockSpec((tm, tk), lambda i, j, kk: (i, kk)),
        pl.BlockSpec((tk, tn), lambda i, j, kk: (kk, j)),
        pl.BlockSpec((1, tn), lambda i, j, kk: (0, j)),
        pl.BlockSpec((1, tn), lambda i, j, kk: (0, j)),
    ]
    if has_skip:
        in_specs.append(pl.BlockSpec((tm, tn), lambda i, j, kk: (i, j)))
    out_bytes = np.dtype(out_dtype).itemsize
    flops = 2 * mp * kp * n
    bytes_acc = mp * kp * 2 + kp * n * 2 + mp * n * out_bytes + (mp * n * 2 if has_skip else 0)
    trans = mp * n if act in ("silu", "sigmoid") else 0
    return pl.pallas_call(
        functools.partial(_mm_kernel, act=act, has_skip=has_skip),
        out_shape=jax.ShapeDtypeStruct((mp, n), out_dtype),
        grid_spec=pltpu.PrefetchScalarGridSpec(
            num_scalar_prefetch=0,
            grid=(mp // tm, n // tn, kp // tk),
            in_specs=in_specs,
            out_specs=pl.BlockSpec((tm, tn), lambda i, j, kk: (i, j)),
            scratch_shapes=[pltpu.VMEM((tm, tn), jnp.float32)],
        ),
        compiler_params=pltpu.CompilerParams(
            dimension_semantics=("parallel", "parallel", "arbitrary"),
            vmem_limit_bytes=_VMEM_LIMIT),
        cost_estimate=pl.CostEstimate(flops=flops, transcendentals=trans,
                                      bytes_accessed=bytes_acc),
    )


def matmul_affine_act(x, w, scale, bias, act, skip=None, out_dtype=jnp.bfloat16):
    """out = act((x @ w) * scale + bias) [+ skip].  x:(M,K) w:(K,N) scale/bias:(N,) skip:(M,N)."""
    m, k = x.shape
    n = w.shape[1]
    xb = x.astype(jnp.bfloat16)
    wb = w.astype(jnp.bfloat16)
    s2 = scale.reshape(1, n).astype(jnp.float32)
    b2 = bias.reshape(1, n).astype(jnp.float32)

    # K tiling (reduction, innermost / "arbitrary"); pad to 128 when an awkward K is tiled.
    if k > 1024:
        kp = _round_up(k, 128)
        if kp != k:
            xb = jnp.pad(xb, ((0, 0), (0, kp - k)))
            wb = jnp.pad(wb, ((0, kp - k), (0, 0)))
        tk = _pick_div(kp, _TK_CAND) or 128
    else:
        kp, tk = k, k

    # M tiling ("parallel"): bigger tiles (512) for large M to amortize per-step overhead.
    if m <= 256:
        mp, tm = m, m
    else:
        tm = 512 if m >= 1024 else 256
        mp = _round_up(m, tm)
        if mp != m:
            xb = jnp.pad(xb, ((0, mp - m), (0, 0)))
            if skip is not None:
                skip = jnp.pad(skip, ((0, mp - m), (0, 0)))

    # N tiling ("parallel").
    if n <= 512 or n % 128 != 0:
        tn = n
    else:
        tn = _pick_div(n, _TN_CAND) or 128

    # v7x shards "parallel" axes over 2 TensorCores: avoid a (1,1,K) grid collapse.
    if mp // tm == 1 and n // tn == 1:
        if n >= 256 and (n // 2) % 128 == 0:
            tn = n // 2
        elif mp >= 16 and mp % 16 == 0:
            tm = mp // 2

    args = [xb, wb, s2, b2]
    has_skip = skip is not None
    if has_skip:
        args.append(skip.astype(jnp.bfloat16))

    out = _build_mm(mp, kp, n, tm, tn, tk, act, has_skip, out_dtype)(*args)
    return out[:m] if mp != m else out


def _se_kernel(x_ref, w1_ref, b1_ref, w2_ref, b2_ref, g_ref, acc_ref, *, inv_hw):
    """Fused SE: mean over HW (tiled, f32 scratch acc) -> fc1(SiLU) -> fc2(sigmoid) gate."""
    t = pl.program_id(1)

    @pl.when(t == 0)
    def _():
        acc_ref[...] = jnp.zeros_like(acc_ref)

    acc_ref[...] += jnp.sum(x_ref[0].astype(jnp.float32), axis=0, keepdims=True)

    @pl.when(t == pl.num_programs(1) - 1)
    def _():
        pooled = (acc_ref[...] * inv_hw).astype(jnp.bfloat16)                      # (1, C)
        h1 = jnp.dot(pooled, w1_ref[...], preferred_element_type=jnp.float32) + b1_ref[...]
        h1 = h1 * jax.nn.sigmoid(h1)                                               # SiLU
        g = jnp.dot(h1.astype(jnp.bfloat16), w2_ref[...],
                    preferred_element_type=jnp.float32) + b2_ref[...]
        g_ref[...] = jax.nn.sigmoid(g).astype(g_ref.dtype)[None]


@functools.lru_cache(maxsize=None)
def _build_se(b, hwp, thw, c, rd, inv_hw):
    return pl.pallas_call(
        functools.partial(_se_kernel, inv_hw=inv_hw),
        out_shape=jax.ShapeDtypeStruct((b, 1, c), jnp.bfloat16),
        grid_spec=pltpu.PrefetchScalarGridSpec(
            num_scalar_prefetch=0,
            grid=(b, hwp // thw),
            in_specs=[
                pl.BlockSpec((1, thw, c), lambda bb, t: (bb, t, 0)),
                pl.BlockSpec((c, rd), lambda bb, t: (0, 0)),
                pl.BlockSpec((1, rd), lambda bb, t: (0, 0)),
                pl.BlockSpec((rd, c), lambda bb, t: (0, 0)),
                pl.BlockSpec((1, c), lambda bb, t: (0, 0)),
            ],
            out_specs=pl.BlockSpec((1, 1, c), lambda bb, t: (bb, 0, 0)),
            scratch_shapes=[pltpu.VMEM((1, c), jnp.float32)],
        ),
        compiler_params=pltpu.CompilerParams(
            dimension_semantics=("parallel", "arbitrary"),
            vmem_limit_bytes=_VMEM_LIMIT),
    )


def se_gate(x3, w1, b1, w2, b2):
    """x3:(B,HW,C) -> sigmoid gate (B,1,C) bf16, one pallas_call (no separate mean / fc calls)."""
    b, hw, c = x3.shape
    rd = w1.shape[1]
    thw = hw if hw <= 512 else 512
    hwp = _round_up(hw, thw)
    xb = x3.astype(jnp.bfloat16)
    if hwp != hw:
        xb = jnp.pad(xb, ((0, 0), (0, hwp - hw), (0, 0)))   # zero rows: don't perturb the sum
    return _build_se(b, hwp, thw, c, rd, 1.0 / hw)(
        xb, w1.astype(jnp.bfloat16), b1.reshape(1, rd).astype(jnp.float32),
        w2.astype(jnp.bfloat16), b2.reshape(1, c).astype(jnp.float32))


def _se_pwl_kernel(*refs, has_skip):
    """Fused SE-gate * (1x1 conv) * BN (+ residual): o = ((x*g) @ w) * s + b [+ skip]."""
    if has_skip:
        x_ref, g_ref, w_ref, s_ref, b_ref, skip_ref, o_ref, acc_ref = refs
    else:
        x_ref, g_ref, w_ref, s_ref, b_ref, o_ref, acc_ref = refs
        skip_ref = None
    kk = pl.program_id(2)

    @pl.when(kk == 0)
    def _():
        acc_ref[...] = jnp.zeros_like(acc_ref)

    xg = x_ref[0] * g_ref[0]                       # bf16 gate multiply (1 VPU pass on v6e/v7x)
    acc_ref[...] += jnp.dot(xg, w_ref[...], preferred_element_type=jnp.float32)

    @pl.when(kk == pl.num_programs(2) - 1)
    def _():
        y = acc_ref[...] * s_ref[...] + b_ref[...]
        if has_skip:
            y = y + skip_ref[0].astype(jnp.float32)
        o_ref[...] = y.astype(o_ref.dtype)[None]


@functools.lru_cache(maxsize=None)
def _build_se_pwl(b, hwp, kp, n, tm, tk, has_skip):
    in_specs = [
        pl.BlockSpec((1, tm, tk), lambda bb, i, kk: (bb, i, kk)),
        pl.BlockSpec((1, 1, tk), lambda bb, i, kk: (bb, 0, kk)),
        pl.BlockSpec((tk, n), lambda bb, i, kk: (kk, 0)),
        pl.BlockSpec((1, n), lambda bb, i, kk: (0, 0)),
        pl.BlockSpec((1, n), lambda bb, i, kk: (0, 0)),
    ]
    if has_skip:
        in_specs.append(pl.BlockSpec((1, tm, n), lambda bb, i, kk: (bb, i, 0)))
    flops = 2 * b * hwp * kp * n
    bytes_acc = b * hwp * kp * 2 + kp * n * 2 + b * hwp * n * 2 * (2 if has_skip else 1)
    return pl.pallas_call(
        functools.partial(_se_pwl_kernel, has_skip=has_skip),
        out_shape=jax.ShapeDtypeStruct((b, hwp, n), jnp.bfloat16),
        grid_spec=pltpu.PrefetchScalarGridSpec(
            num_scalar_prefetch=0,
            grid=(b, hwp // tm, kp // tk),
            in_specs=in_specs,
            out_specs=pl.BlockSpec((1, tm, n), lambda bb, i, kk: (bb, i, 0)),
            scratch_shapes=[pltpu.VMEM((tm, n), jnp.float32)],
        ),
        compiler_params=pltpu.CompilerParams(
            dimension_semantics=("parallel", "parallel", "arbitrary"),
            vmem_limit_bytes=_VMEM_LIMIT),
        cost_estimate=pl.CostEstimate(flops=flops, transcendentals=0,
                                      bytes_accessed=bytes_acc),
    )


def se_pwl_residual(x3, g3, w2d, scale, bias, skip3=None):
    """x3:(B,HW,K) g3:(B,1,K) w2d:(K,N) scale/bias:(N,) skip3:(B,HW,N) -> (B,HW,N) bf16."""
    b, hw, k = x3.shape
    n = w2d.shape[1]
    xb = x3.astype(jnp.bfloat16)
    gb = g3.astype(jnp.bfloat16)
    wb = w2d.astype(jnp.bfloat16)
    s2 = scale.reshape(1, n).astype(jnp.float32)
    b2 = bias.reshape(1, n).astype(jnp.float32)

    if k > 1024:
        kp = _round_up(k, 128)
        if kp != k:
            xb = jnp.pad(xb, ((0, 0), (0, 0), (0, kp - k)))
            gb = jnp.pad(gb, ((0, 0), (0, 0), (0, kp - k)))
            wb = jnp.pad(wb, ((0, kp - k), (0, 0)))
        tk = _pick_div(kp, _TK_CAND) or 128
    else:
        kp, tk = k, k

    if hw <= 256:
        hwp, tm = hw, hw
    else:
        tm = 512 if hw >= 1024 else 256
        hwp = _round_up(hw, tm)
        if hwp != hw:
            xb = jnp.pad(xb, ((0, 0), (0, hwp - hw), (0, 0)))
            if skip3 is not None:
                skip3 = jnp.pad(skip3, ((0, 0), (0, hwp - hw), (0, 0)))

    args = [xb, gb, wb, s2, b2]
    has_skip = skip3 is not None
    if has_skip:
        args.append(skip3.astype(jnp.bfloat16))
    out = _build_se_pwl(b, hwp, kp, n, tm, tk, has_skip)(*args)
    return out[:, :hw] if hwp != hw else out


def _dw_kernel(p_ref, w_ref, s_ref, b_ref, o_ref, *, taps, act):
    acc = p_ref[0].astype(jnp.float32) * w_ref[0]
    for t in range(1, taps):
        acc = acc + p_ref[t].astype(jnp.float32) * w_ref[t]
    o_ref[...] = _apply_act(acc * s_ref[...] + b_ref[...], act).astype(o_ref.dtype)


@functools.lru_cache(maxsize=None)
def _build_dw(taps, mp, tm, c, act):
    return pl.pallas_call(
        functools.partial(_dw_kernel, taps=taps, act=act),
        out_shape=jax.ShapeDtypeStruct((mp, c), jnp.bfloat16),
        grid_spec=pltpu.PrefetchScalarGridSpec(
            num_scalar_prefetch=0,
            grid=(mp // tm,),
            in_specs=[
                pl.BlockSpec((taps, tm, c), lambda i: (0, i, 0)),
                pl.BlockSpec((taps, 1, c), lambda i: (0, 0, 0)),
                pl.BlockSpec((1, c), lambda i: (0, 0)),
                pl.BlockSpec((1, c), lambda i: (0, 0)),
            ],
            out_specs=pl.BlockSpec((tm, c), lambda i: (i, 0)),
        ),
        compiler_params=pltpu.CompilerParams(
            dimension_semantics=("parallel",),
            vmem_limit_bytes=_VMEM_LIMIT),
    )


def dw_affine_act(pm, w, scale, bias, act):
    """Depthwise conv tap accumulation, tiled over M.  pm:(taps,M,C) bf16 -> (M,C) bf16."""
    taps, m, c = pm.shape
    # keep double-buffered patch tile under ~8 MiB
    tm_cap = max(8, ((8 * 1024 * 1024) // (taps * c * 2 * 2)) // 8 * 8)
    tm = min(512, tm_cap)
    if m <= tm:
        tm, mp = m, m
    else:
        mp = _round_up(m, tm)
        if mp != m:
            pm = jnp.pad(pm, ((0, 0), (0, mp - m), (0, 0)))
    out = _build_dw(taps, mp, tm, c, act)(
        pm.astype(jnp.bfloat16), w.reshape(taps, 1, c).astype(jnp.float32),
        scale.reshape(1, c).astype(jnp.float32), bias.reshape(1, c).astype(jnp.float32))
    return out[:m] if mp != m else out


# --------------------------------------------------------------------------------------
# Plain-JAX glue: padding / im2col / layout plumbing (no heavy compute)
# --------------------------------------------------------------------------------------
def _same_pads(size, k, s):
    out = -(-size // s)
    pad = max((out - 1) * s + k - size, 0)
    return pad // 2, pad - pad // 2


def _extract_patches(x, kh, kw, sh, sw):
    # x already padded: (B, Hp, Wp, C) -> (B, oh, ow, kh*kw, C)
    _, h, w, _ = x.shape
    oh = (h - kh) // sh + 1
    ow = (w - kw) // sw + 1
    cols = [x[:, i:i + sh * oh:sh, j:j + sw * ow:sw, :]
            for i in range(kh) for j in range(kw)]
    return jnp.stack(cols, axis=3), oh, ow


def _extract_patches_dw(x, kh, kw, sh, sw):
    # taps-leading layout (no extra transpose): (taps, B, oh, ow, C)
    _, h, w, _ = x.shape
    oh = (h - kh) // sh + 1
    ow = (w - kw) // sw + 1
    cols = [x[:, i:i + sh * oh:sh, j:j + sw * ow:sw, :]
            for i in range(kh) for j in range(kw)]
    return jnp.stack(cols, axis=0), oh, ow


def conv2d_bn_act(x, w, scale, bias, stride, act, skip=None, out_dtype=jnp.bfloat16):
    kh, kw, cin, cout = w.shape
    bsz = x.shape[0]
    xb = x.astype(jnp.bfloat16)                       # bf16 patches: half the HBM bytes
    if kh == 1 and kw == 1 and stride == 1:
        oh, ow = x.shape[1], x.shape[2]
        pm = xb.reshape(bsz * oh * ow, cin)
    else:
        pad_t, pad_b = _same_pads(x.shape[1], kh, stride)
        pad_l, pad_r = _same_pads(x.shape[2], kw, stride)
        xb = jnp.pad(xb, ((0, 0), (pad_t, pad_b), (pad_l, pad_r), (0, 0)))
        patches, oh, ow = _extract_patches(xb, kh, kw, stride, stride)
        pm = patches.reshape(bsz * oh * ow, kh * kw * cin)
    wm = w.reshape(kh * kw * cin, cout)
    skip_m = skip.reshape(bsz * oh * ow, cout) if skip is not None else None
    y = matmul_affine_act(pm, wm, scale, bias, act, skip=skip_m, out_dtype=out_dtype)
    return y.reshape(bsz, oh, ow, cout)


def dwconv2d_bn_act(x, w, scale, bias, stride, act):
    kh, kw, c = w.shape
    bsz = x.shape[0]
    xb = x.astype(jnp.bfloat16)
    pad_t, pad_b = _same_pads(x.shape[1], kh, stride)
    pad_l, pad_r = _same_pads(x.shape[2], kw, stride)
    xb = jnp.pad(xb, ((0, 0), (pad_t, pad_b), (pad_l, pad_r), (0, 0)))
    patches, oh, ow = _extract_patches_dw(xb, kh, kw, stride, stride)
    taps = kh * kw
    pm = patches.reshape(taps, bsz * oh * ow, c)
    y = dw_affine_act(pm, w.reshape(taps, c), scale, bias, act)
    return y.reshape(bsz, oh, ow, c)


def conv_transpose_bn_relu(x, p, out_dtype):
    """ConvTranspose2d(k=3, s=2, pad=0) + BN + ReLU: the 4 sub-pixel phase kernels are
    concatenated along N over a shared 2x2 patch tensor (single matmul, shared LHS reads),
    then interleaved with one reshape/transpose instead of 4 strided scatters."""
    bsz, h, w_, cin = x.shape
    cout = p["cout"]
    xp = jnp.pad(x.astype(jnp.bfloat16), ((0, 0), (1, 1), (1, 1), (0, 0)))
    patches, oh, ow = _extract_patches(xp, 2, 2, 1, 1)                 # oh=h+1, ow=w+1
    pm = patches.reshape(bsz * oh * ow, 4 * cin)
    y = matmul_affine_act(pm, p["w"], p["s"], p["b"], "relu", out_dtype=out_dtype)
    y = y.reshape(bsz, oh, ow, 2, 2, cout)                             # (..., di, dj, C)
    y = jnp.transpose(y, (0, 1, 3, 2, 4, 5)).reshape(bsz, 2 * oh, 2 * ow, cout)
    return y[:, :2 * h + 1, :2 * w_ + 1, :]


# --------------------------------------------------------------------------------------
# Deterministic synthetic parameters (tf_efficientnetv2_b0 shapes, zero-padded channels)
# --------------------------------------------------------------------------------------
class _Init:
    def __init__(self, seed):
        self._key = jax.random.PRNGKey(seed)
        self._n = 0

    def _next(self):
        self._n += 1
        return jax.random.fold_in(self._key, self._n)

    def normal(self, shape, scale=1.0):
        return scale * jax.random.normal(self._next(), shape, jnp.float32)

    def conv(self, kh, kw, cin, cout):
        return self.normal((kh, kw, cin, cout), 1.0 / np.sqrt(kh * kw * cin))

    def dwconv(self, kh, kw, c):
        return self.normal((kh, kw, c), 1.0 / np.sqrt(kh * kw))

    def bias(self, c):
        return self.normal((c,), 0.02)

    def bn(self, c, eps):
        gamma = 1.0 + self.normal((c,), 0.05)
        beta = self.normal((c,), 0.02)
        # inference-mode BN with running_mean=0, running_var=1 folded into scale/bias
        return gamma / jnp.sqrt(1.0 + eps), beta


def build_params(nc=3, seed=0):
    ini = _Init(seed)
    params = {}

    s, b = ini.bn(STEM_CH, BN_EPS_BACKBONE)
    params["stem"] = {"w": ini.conv(3, 3, nc, STEM_CH), "s": s, "b": b}

    stages = []
    cin = STEM_CH
    for (btype, reps, k, stride, exp, cout, se_ratio) in V2_B0_CFG:
        blocks = []
        for r in range(reps):
            st = stride if r == 0 else 1
            cin_p, cout_p = _pad_ch(cin), _pad_ch(cout)
            blk = {"type": btype, "stride": st, "in": cin, "out": cout,
                   "in_p": cin_p, "out_p": cout_p}
            if btype == "cn":
                s1, b1 = ini.bn(cout, BN_EPS_BACKBONE)
                blk["conv"] = {"w": _pad_to(ini.conv(k, k, cin, cout), (k, k, cin_p, cout_p)),
                               "s": _pad_to(s1, (cout_p,)), "b": _pad_to(b1, (cout_p,))}
            elif btype == "er":  # FusedMBConv / EdgeResidual
                mid = cin * exp
                mid_p = _pad_ch(mid)
                s1, b1 = ini.bn(mid, BN_EPS_BACKBONE)
                s2, b2 = ini.bn(cout, BN_EPS_BACKBONE)
                blk["exp"] = {"w": _pad_to(ini.conv(k, k, cin, mid), (k, k, cin_p, mid_p)),
                              "s": _pad_to(s1, (mid_p,)), "b": _pad_to(b1, (mid_p,))}
                blk["pwl"] = {"w": _pad_to(ini.conv(1, 1, mid, cout), (1, 1, mid_p, cout_p)),
                              "s": _pad_to(s2, (cout_p,)), "b": _pad_to(b2, (cout_p,))}
            else:  # "ir": MBConv with SE
                mid = cin * exp
                mid_p = _pad_ch(mid)
                rd = max(1, int(round(cin * se_ratio)))
                s1, b1 = ini.bn(mid, BN_EPS_BACKBONE)
                s2, b2 = ini.bn(mid, BN_EPS_BACKBONE)
                s3, b3 = ini.bn(cout, BN_EPS_BACKBONE)
                blk["pw"] = {"w": _pad_to(ini.conv(1, 1, cin, mid), (1, 1, cin_p, mid_p)),
                             "s": _pad_to(s1, (mid_p,)), "b": _pad_to(b1, (mid_p,))}
                blk["dw"] = {"w": _pad_to(ini.dwconv(k, k, mid), (k, k, mid_p)),
                             "s": _pad_to(s2, (mid_p,)), "b": _pad_to(b2, (mid_p,))}
                # NOTE: gate pad lanes evaluate sigmoid(0)=0.5, but the matching activation and
                # pwl-weight pad rows are exactly zero, so padded lanes stay zero end-to-end.
                blk["se"] = {
                    "w1": _pad_to(ini.conv(1, 1, mid, rd).reshape(mid, rd), (mid_p, rd)),
                    "b1": ini.bias(rd),
                    "w2": _pad_to(ini.conv(1, 1, rd, mid).reshape(rd, mid), (rd, mid_p)),
                    "b2": _pad_to(ini.bias(mid), (mid_p,)),
                }
                blk["pwl"] = {"w": _pad_to(ini.conv(1, 1, mid, cout).reshape(mid, cout),
                                           (mid_p, cout_p)),
                              "s": _pad_to(s3, (cout_p,)), "b": _pad_to(b3, (cout_p,))}
            blocks.append(blk)
            cin = cout
        stages.append(blocks)
    params["stages"] = stages

    cin_p = _pad_ch(cin)
    sh, bh = ini.bn(NUM_FEATURES, BN_EPS_BACKBONE)
    params["head"] = {"w": _pad_to(ini.conv(1, 1, cin, NUM_FEATURES),
                                   (1, 1, cin_p, NUM_FEATURES)),
                      "s": sh, "b": bh}

    # upsample head: 2 x (ConvTranspose2d k3 s2 + BN + ReLU) as fused 4-phase matmuls
    ups = []
    uc_in = NUM_FEATURES
    for uc_out in (512, 256):
        # PyTorch ConvTranspose2d weight layout (Cin, Cout, kh, kw)
        wt = ini.normal((uc_in, uc_out, 3, 3), 1.0 / np.sqrt(uc_in * 9))
        bconv = ini.bias(uc_out)
        s_bn, beta = ini.bn(uc_out, BN_EPS_HEAD)
        W = jnp.transpose(wt, (2, 3, 0, 1))                               # (ky, kx, Cin, Cout)
        # sub-pixel phase kernels laid out on the shared 2x2 patch of the 1-padded input;
        # phase group g = 2*di + dj where di/dj = output row/col parity.
        Wf = jnp.zeros((2, 2, uc_in, 4, uc_out), jnp.float32)
        Wf = Wf.at[0, 0, :, 0].set(W[2, 2]).at[0, 1, :, 0].set(W[2, 0])
        Wf = Wf.at[1, 0, :, 0].set(W[0, 2]).at[1, 1, :, 0].set(W[0, 0])   # ee
        Wf = Wf.at[0, 1, :, 1].set(W[2, 1]).at[1, 1, :, 1].set(W[0, 1])   # eo
        Wf = Wf.at[1, 0, :, 2].set(W[1, 2]).at[1, 1, :, 2].set(W[1, 0])   # oe
        Wf = Wf.at[1, 1, :, 3].set(W[1, 1])                               # oo
        # fold conv bias through BN: (y + bconv) * s_bn + beta, replicated per phase group
        ups.append({"w": Wf.reshape(4 * uc_in, 4 * uc_out),
                    "s": jnp.tile(s_bn, 4),
                    "b": jnp.tile(bconv * s_bn + beta, 4),
                    "cout": uc_out})
        uc_in = uc_out
    params["upsample"] = ups
    return params


# --------------------------------------------------------------------------------------
# Forward
# --------------------------------------------------------------------------------------
def _run_block(x, blk):
    st = blk["stride"]
    use_skip = (st == 1) and (blk["in"] == blk["out"])
    if blk["type"] == "cn":
        c = blk["conv"]
        return conv2d_bn_act(x, c["w"], c["s"], c["b"], st, "silu",
                             skip=(x if use_skip else None))
    if blk["type"] == "er":
        h = conv2d_bn_act(x, blk["exp"]["w"], blk["exp"]["s"], blk["exp"]["b"], st, "silu")
        return conv2d_bn_act(h, blk["pwl"]["w"], blk["pwl"]["s"], blk["pwl"]["b"], 1, "none",
                             skip=(x if use_skip else None))
    # "ir": 1x1 expand -> 3x3 depthwise -> fused SE gate -> fused (gate * pwl * BN [+ residual])
    h = conv2d_bn_act(x, blk["pw"]["w"], blk["pw"]["s"], blk["pw"]["b"], 1, "silu")
    h = dwconv2d_bn_act(h, blk["dw"]["w"], blk["dw"]["s"], blk["dw"]["b"], st, "silu")
    bsz, oh, ow, cmid = h.shape
    hf = h.reshape(bsz, oh * ow, cmid)
    se = blk["se"]
    g3 = se_gate(hf, se["w1"], se["b1"], se["w2"], se["b2"])             # (B,1,Cmid) bf16
    skip3 = x.reshape(bsz, oh * ow, x.shape[3]) if use_skip else None
    y3 = se_pwl_residual(hf, g3, blk["pwl"]["w"], blk["pwl"]["s"], blk["pwl"]["b"], skip3)
    return y3.reshape(bsz, oh, ow, blk["out_p"])


def efficientnetv2_backbone_forward(x_nchw, params):
    """x_nchw: (B, nc, H, W) -> NCHW feature map matching the PyTorch module."""
    x = jnp.transpose(x_nchw, (0, 2, 3, 1)).astype(jnp.float32)  # NCHW -> NHWC
    # features = conv_stem + bn1(SiLU) + blocks + conv_head + bn2(SiLU)
    h = conv2d_bn_act(x, params["stem"]["w"], params["stem"]["s"], params["stem"]["b"],
                      2, "silu")
    for blocks in params["stages"]:
        for blk in blocks:
            h = _run_block(h, blk)
    h = conv2d_bn_act(h, params["head"]["w"], params["head"]["s"], params["head"]["b"],
                      1, "silu")
    # upsample head: 2 x (ConvTranspose2d k3 s2 -> BN -> ReLU); last one emits f32
    ups = params["upsample"]
    for idx, p in enumerate(ups):
        out_dtype = jnp.float32 if idx == len(ups) - 1 else jnp.bfloat16
        h = conv_transpose_bn_relu(h, p, out_dtype)
    return jnp.transpose(h, (0, 3, 1, 2))  # back to NCHW


if __name__ == "__main__":
    key = jax.random.PRNGKey(0)
    x = jax.random.normal(key, (2, 3, 16, 16), jnp.float32)  # NCHW, nc=3
    params = build_params(nc=3, seed=0)

    out = efficientnetv2_backbone_forward(x, params)
    out = jax.block_until_ready(out)

    # 16x16 input -> features 1x1x1280 -> ConvT(3,s2): 3x3x512 -> ConvT(3,s2): 7x7x256
    assert out.shape == (2, 256, 7, 7), out.shape
    assert out.dtype == jnp.float32
    assert bool(jnp.all(jnp.isfinite(out)))
    print("KERNEL_OK")
</pallas_src>

<mosaic_0001>
module attributes {stable_mosaic.version = 11 : i64} {
  func.func @_mm_kernel(%arg0: i32, %arg1: i32, %arg2: i32, %arg3: memref<64x27xbf16, #tpu.memory_space<vmem>>, %arg4: memref<27x32xbf16, #tpu.memory_space<vmem>>, %arg5: memref<1x32xf32, #tpu.memory_space<vmem>>, %arg6: memref<1x32xf32, #tpu.memory_space<vmem>>, %arg7: memref<64x32xbf16, #tpu.memory_space<vmem>>, %arg8: memref<64x32xf32, #tpu.memory_space<vmem>>) attributes {dimension_semantics = [#tpu.dimension_semantics<parallel>, #tpu.dimension_semantics<parallel>, #tpu.dimension_semantics<arbitrary>], iteration_bounds = array<i64: 2, 1, 1>, scalar_prefetch = 0 : i64, scratch_operands = 1 : i64, tpu.core_type = #tpu.core_type<tc>, window_params = [{transform_indices = @transform_0, window_bounds = array<i64: 64, 27>}, {transform_indices = @transform_1, window_bounds = array<i64: 27, 32>}, {transform_indices = @transform_2, window_bounds = array<i64: 1, 32>}, {transform_indices = @transform_3, window_bounds = array<i64: 1, 32>}, {transform_indices = @transform_4, window_bounds = array<i64: 64, 32>}]} {
    %c0_i32 = arith.constant 0 : i32
    %0 = arith.cmpi eq, %arg2, %c0_i32 : i32
    %1 = arith.extui %0 : i1 to i32
    %c0_i32_0 = arith.constant 0 : i32
    %2 = arith.cmpi ne, %1, %c0_i32_0 : i32
    scf.if %2 {
      %cst_10 = arith.constant 0.000000e+00 : f32
      %12 = vector.broadcast %cst_10 : f32 to vector<64x32xf32>
      %c0_11 = arith.constant 0 : index
      %c0_12 = arith.constant 0 : index
      %13 = vector.load %arg8[%c0_11, %c0_12] : memref<64x32xf32, #tpu.memory_space<vmem>>, vector<64x32xf32>
      tpu.vector_store %arg8[%c0_11, %c0_12], %12 {strides = array<i32>} : memref<64x32xf32, #tpu.memory_space<vmem>>, vector<64x32xf32>,
    } else {
    }
    %c0 = arith.constant 0 : index
    %c0_1 = arith.constant 0 : index
    %3 = vector.load %arg8[%c0, %c0_1] : memref<64x32xf32, #tpu.memory_space<vmem>>, vector<64x32xf32>
    %c0_2 = arith.constant 0 : index
    %c0_3 = arith.constant 0 : index
    %4 = vector.load %arg3[%c0_2, %c0_3] : memref<64x27xbf16, #tpu.memory_space<vmem>>, vector<64x27xbf16>
    %c0_4 = arith.constant 0 : index
    %c0_5 = arith.constant 0 : index
    %5 = vector.load %arg4[%c0_4, %c0_5] : memref<27x32xbf16, #tpu.memory_space<vmem>>, vector<27x32xbf16>
    %cst = arith.constant dense<0.000000e+00> : vector<64x32xf32>
    %6 = tpu.matmul %4, %5, %cst {dimension_numbers = #tpu.dot_dimension_numbers<[1], [0], [0], [1], [0, 0, 1, 1], [], []>} : vector<64x27xbf16>, vector<27x32xbf16>, vector<64x32xf32> -> vector<64x32xf32>
    %7 = arith.addf %3, %6 : vector<64x32xf32>
    %c0_6 = arith.constant 0 : index
    %c0_7 = arith.constant 0 : index
    %8 = vector.load %arg8[%c0_6, %c0_7] : memref<64x32xf32, #tpu.memory_space<vmem>>, vector<64x32xf32>
    tpu.vector_store %arg8[%c0_6, %c0_7], %7 {strides = array<i32>} : memref<64x32xf32, #tpu.memory_space<vmem>>, vector<64x32xf32>,
    %c0_i32_8 = arith.constant 0 : i32
    %9 = arith.cmpi eq, %arg2, %c0_i32_8 : i32
    %10 = arith.extui %9 : i1 to i32
    %c0_i32_9 = arith.constant 0 : i32
    %11 = arith.cmpi ne, %10, %c0_i32_9 : i32
    scf.if %11 {
      %c0_10 = arith.constant 0 : index
      %c0_11 = arith.constant 0 : index
      %12 = vector.load %arg8[%c0_10, %c0_11] : memref<64x32xf32, #tpu.memory_space<vmem>>, vector<64x32xf32>
      %c0_12 = arith.constant 0 : index
      %c0_13 = arith.constant 0 : index
      %13 = vector.load %arg5[%c0_12, %c0_13] : memref<1x32xf32, #tpu.memory_space<vmem>>, vector<1x32xf32>
      %14 = vector.broadcast %13 : vector<1x32xf32> to vector<64x32xf32>
      %15 = arith.mulf %12, %14 : vector<64x32xf32>
      %c0_14 = arith.constant 0 : index
      %c0_15 = arith.constant 0 : index
      %16 = vector.load %arg6[%c0_14, %c0_15] : memref<1x32xf32, #tpu.memory_space<vmem>>, vector<1x32xf32>
      %17 = vector.broadcast %16 : vector<1x32xf32> to vector<64x32xf32>
      %18 = arith.addf %15, %17 : vector<64x32xf32>
      %19 = arith.negf %18 : vector<64x32xf32>
      %20 = math.exp %19 : vector<64x32xf32>
      %cst_16 = arith.constant 1.000000e+00 : f32
      %21 = vector.broadcast %cst_16 : f32 to vector<64x32xf32>
      %22 = arith.addf %21, %20 : vector<64x32xf32>
      %23 = arith.divf %21, %22 : vector<64x32xf32>
      %24 = arith.mulf %18, %23 : vector<64x32xf32>
      %25 = arith.truncf %24 : vector<64x32xf32> to vector<64x32xbf16>
      %c0_17 = arith.constant 0 : index
      %c0_18 = arith.constant 0 : index
      %26 = vector.load %arg7[%c0_17, %c0_18] : memref<64x32xbf16, #tpu.memory_space<vmem>>, vector<64x32xbf16>
      tpu.vector_store %arg7[%c0_17, %c0_18], %25 {strides = array<i32>} : memref<64x32xbf16, #tpu.memory_space<vmem>>, vector<64x32xbf16>,
    } else {
    }
    return
  }
  func.func @transform_0(%arg0: i32, %arg1: i32, %arg2: i32) -> (i32, i32) {
    %c0_i32 = arith.constant 0 : i32
    return %arg0, %arg2 : i32, i32
  }
  func.func @transform_1(%arg0: i32, %arg1: i32, %arg2: i32) -> (i32, i32) {
    %c0_i32 = arith.constant 0 : i32
    return %arg2, %arg1 : i32, i32
  }
  func.func @transform_2(%arg0: i32, %arg1: i32, %arg2: i32) -> (i32, i32) {
    %c0_i32 = arith.constant 0 : i32
    %c0_i32_0 = arith.constant 0 : i32
    return %c0_i32, %arg1 : i32, i32
  }
  func.func @transform_3(%arg0: i32, %arg1: i32, %arg2: i32) -> (i32, i32) {
    %c0_i32 = arith.constant 0 : i32
    %c0_i32_0 = arith.constant 0 : i32
    return %c0_i32, %arg1 : i32, i32
  }
  func.func @transform_4(%arg0: i32, %arg1: i32, %arg2: i32) -> (i32, i32) {
    %c0_i32 = arith.constant 0 : i32
    return %arg0, %arg1 : i32, i32
  }
}

</mosaic_0001>

<bundles_post_ra>
// kernel: tpu_custom_call.1
= control target key start
LH: loop header
LB: loop body
LE: loop exit
PB: predicated region body
PF: predicated region fallthrough
CT: control target
= control target key end

     0   :  { %s915_s15 = smov 0   ;;  %s917_s16 = smov 0   ;;  %s998_s0 = inlined_call_operand.vmem [shape: bf16[128,27], index: 0, kind: input, shape index: {}]   ;;  %s999_s1 = inlined_call_operand.vmem [shape: bf16[27,32], index: 1, kind: input, shape index: {}]   ;;  %s1000_s2 = inlined_call_operand.vmem [shape: f32[1,32], index: 2, kind: input, shape index: {}]   ;;  %s1001_s3 = inlined_call_operand.vmem [shape: f32[1,32], index: 3, kind: input, shape index: {}]   ;;  %s1002_s4 = inlined_call_operand.vmem [shape: bf16[128,32], index: 4, kind: output, shape index: {}]  }
   0x1   :  { %s919_s17 = smov 0  }
   0x2 LB: > { %s33_s18 = sadd.s32 1, %s882_s16  ;;  %p735_p0 = scmp.ge.s32.totalorder %s886_s17, 1  ;;  %s886_s17 = sphi %s919_s17, %s14_s17   ;;  %s882_s16 = sphi %s917_s16, %s1004_s16   ;;  %s878_s15 = sphi %s915_s15, %s1003_s15  }
   0x3   : > { %p35_p1 = scmp.ge.s32.totalorder %s33_s18, 2  ;;  %p221_p2 = scmp.lt.s32.totalorder %s886_s17, 3 }
   0x5   : > { %s1006_s18 = smov (%p35_p1, %s33_s18), 0  ;;  %p222_p3 = pnand %p735_p0, %p221_p2 }
   0x6   : > { %s736_s21 = sshll.u32 (!%p222_p3), %s878_s15, 3 }
   0x7   : > { %225 = sbr.rel (%p222_p3) target bundleno = 276 (0x114), region = 36  ;;  %p268_p4 = scmp.lt.s32.totalorder (!%p222_p3), %s736_s21, 15 }
   0xc   : > { %v826_v0 = vld [vmem:[%s999_s1 + $0x8] sm:$0x3f]   ;;  %vm378_vm0 = vcmask 1044480   ;;  %vm379_vm1 = vcmask 1045504   ;;  %v888_v1 = vmov 65535   ;;  %vm305_vm2 = vcmask 261120  }
   0xd   : > { %v380_v2 = vsel %vm378_vm0, 4294967295, %v888_v1  ;;  %v827_v5 = vld [vmem:[%s999_s1] sm:$0xff]   ;;  %v889_v6 = vmov 0.0   ;;  %s1008_s21 = smov (!%p268_p4, %s736_s21), 15  ;;  %vm365_vm3 = vcmask 220160   ;;  %vm596_vm4 = vcmask 257024  }
   0xe   : > { %v381_v3 = vsel %vm379_vm1, %v380_v2, 0  ;;  %308 = vst.msk [vmem:[#allocation2 + $0x10] sm:$0xff] %vm305_vm2, %v889_v6  ;;  %306 = vst.msk [vmem:[#allocation2] sm:$0xff] %vm305_vm2, %v889_v6  ;;  %s737_s24 = sshll.u32 %s1008_s21, 2  ;;  %v750_v35 = vld [vmem:[%s1000_s2] ss:$0 sm:$0xff] }
   0xf   : > { %v383_v4 = vand.u32 %v826_v0, %v381_v3  ;;  %307 = vst.msk [vmem:[#allocation2 + $0x8] sm:$0xff] %vm305_vm2, %v889_v6  ;;  %309 = vst.msk [vmem:[#allocation2 + $0x18] sm:$0xff] %vm305_vm2, %v889_v6  ;;  %s274_s27 = scalar_lea.vmem %s998_s0, %s737_s24  ;;  %v751_v37 = vld [vmem:[%s1001_s3] ss:$0 sm:$0xff]  ;;  %s298_s8 = scalar_lea.vmem %s1002_s4, %s737_s24 }
  0x10   : > { %310 = vst.msk [vmem:[#allocation2 + $0x20] sm:$0xff] %vm305_vm2, %v889_v6  ;;  %311 = vst.msk [vmem:[#allocation2 + $0x28] sm:$0xff] %vm305_vm2, %v889_v6  ;;  %v828_v7 = vld [vmem:[%s274_s27] sm:$0xff]   ;;  %v829_v8 = vld [vmem:[%s274_s27 + $0x10] sm:$0xff]  }
  0x11   : > { %312 = vst.msk [vmem:[#allocation2 + $0x30] sm:$0xff] %vm305_vm2, %v889_v6  ;;  %313 = vst.msk [vmem:[#allocation2 + $0x38] sm:$0xff] %vm305_vm2, %v889_v6  ;;  %784 = vmatprep.subr.bf16.mxu0 %v383_v4  ;;  %796 = vmatprep.subr.bf16.mxu1 %v383_v4  ;;  %v830_v9 = vld [vmem:[%s274_s27 + $0x8] sm:$0xff]   ;;  %v831_v10 = vld [vmem:[%s274_s27 + $0x18] sm:$0xff]  }
  0x12   : > { %785 = vmatpush3.bf16.msra.mxu0 %v383_v4  ;;  %798 = vmatpush3.bf16.msra.mxu1 %v383_v4 }
  0x13   : > { %786 = vmatprep.subr.bf16.mxu0 %v827_v5  ;;  %797 = vmatprep.subr.bf16.mxu1 %v827_v5 }
  0x14   : > { %788 = vmatprep.mubr.msk.bf16.mxu0 %vm365_vm3, %v828_v7  ;;  %792 = vmatprep.mubr.msk.bf16.mxu1 %vm365_vm3, %v829_v8 }
  0x15   : > { %v316_v11 = vld [vmem:[#allocation2 + $0x10] sm:$0xff]  ;;  %v314_v15 = vld [vmem:[#allocation2] sm:$0xff] }
  0x16   : > { %787 = vmatpush3.bf16.msra.mxu0 %v827_v5  ;;  %799 = vmatpush3.bf16.msra.mxu1 %v827_v5  ;;  %v317_v21 = vld [vmem:[#allocation2 + $0x18] sm:$0xff]  ;;  %v315_v27 = vld [vmem:[#allocation2 + $0x8] sm:$0xff] }
  0x17   : > { %v318_v16 = vld [vmem:[#allocation2 + $0x20] sm:$0xff]  ;;  %v319_v28 = vld [vmem:[#allocation2 + $0x28] sm:$0xff] }
  0x18   : > { %v320_v12 = vld [vmem:[#allocation2 + $0x30] sm:$0xff]  ;;  %v321_v22 = vld [vmem:[#allocation2 + $0x38] sm:$0xff] }
  0x19   : > { %789 = vmatmul.mubr.msk.bf16.vlgmr.msra.gmra.mxu0 %vm365_vm3, %v830_v9  ;;  %793 = vmatmul.mubr.msk.bf16.vlgmr.msra.gmra.mxu1 %vm365_vm3, %v831_v10 }
  0xd9   : > { %v790_v13 = vpop.f32.mrf.mxu0  ;;  %v794_v14 = vpop.f32.mrf.mxu1 }
  0xda   : > { %v452_v17 = vadd.f32 %v790_v13, %v316_v11  ;;  %v456_v18 = vadd.f32 %v794_v14, %v320_v12 }
  0xdb   : > { %v419_v19 = vpop.f32.mrf.mxu0  ;;  %v435_v20 = vpop.f32.mrf.mxu1 }
  0xdc   : > { %461 = vst.msk [vmem:[#allocation2 + $0x10] sm:$0xff] %vm305_vm2, %v452_v17  ;;  %465 = vst.msk [vmem:[#allocation2 + $0x30] sm:$0xff] %vm305_vm2, %v456_v18  ;;  %v450_v23 = vadd.f32 %v419_v19, %v314_v15  ;;  %v454_v24 = vadd.f32 %v435_v20, %v318_v16 }
  0xdd   : > { %v791_v25 = vpop.f32.mrf.mxu0  ;;  %v795_v26 = vpop.f32.mrf.mxu1 }
  0xde   : > { %459 = vst.msk [vmem:[#allocation2] sm:$0xff] %vm305_vm2, %v450_v23  ;;  %463 = vst.msk [vmem:[#allocation2 + $0x20] sm:$0xff] %vm305_vm2, %v454_v24  ;;  %v453_v29 = vadd.f32 %v791_v25, %v317_v21  ;;  %v457_v30 = vadd.f32 %v795_v26, %v321_v22 }
  0xdf   : > { %v422_v31 = vpop.f32.mrf.mxu0  ;;  %v438_v32 = vpop.f32.mrf.mxu1 }
  0xe0   : > { %462 = vst.msk [vmem:[#allocation2 + $0x18] sm:$0xff] %vm305_vm2, %v453_v29  ;;  %466 = vst.msk [vmem:[#allocation2 + $0x38] sm:$0xff] %vm305_vm2, %v457_v30  ;;  %v451_v33 = vadd.f32 %v422_v31, %v315_v27  ;;  %v455_v34 = vadd.f32 %v438_v32, %v319_v28 }
  0xe2   : > { %460 = vst.msk [vmem:[#allocation2 + $0x8] sm:$0xff] %vm305_vm2, %v451_v33  ;;  %464 = vst.msk [vmem:[#allocation2 + $0x28] sm:$0xff] %vm305_vm2, %v455_v34 }
  0xe3   : > { %v472_v36 = vld [vmem:[#allocation2 + $0x10] sm:$0xff] }
  0xe4   : > { %v476_v38 = vld [vmem:[#allocation2 + $0x30] sm:$0xff]  ;;  %v487_v39 = vmul.f32 %v750_v35, %v472_v36 }
  0xe5   : > { %v491_v40 = vmul.f32 %v750_v35, %v476_v38  ;;  %v470_v41 = vld [vmem:[#allocation2] sm:$0xff] }
  0xe6   : > { %v474_v42 = vld [vmem:[#allocation2 + $0x20] sm:$0xff]  ;;  %v502_v43 = vadd.f32 %v751_v37, %v487_v39  ;;  %v485_v45 = vmul.f32 %v750_v35, %v470_v41 }
  0xe7   : > { %v972_v44 = vadd.f32 %v751_v37, %v491_v40  ;;  %v489_v46 = vmul.f32 %v750_v35, %v474_v42  ;;  %v473_v47 = vld [vmem:[#allocation2 + $0x18] sm:$0xff] }
  0xe8   : > { %v477_v48 = vld [vmem:[#allocation2 + $0x38] sm:$0xff]  ;;  %v754_v49 = vmul.f32 -1.442695, %v502_v43  ;;  %v500_v51 = vadd.f32 %v751_v37, %v485_v45  ;;  %v488_v53 = vmul.f32 %v750_v35, %v473_v47 }
  0xe9   : > { %v758_v50 = vmul.f32 -1.442695, %v972_v44  ;;  %v504_v52 = vadd.f32 %v751_v37, %v489_v46  ;;  %v492_v54 = vmul.f32 %v750_v35, %v477_v48  ;;  %v471_v55 = vld [vmem:[#allocation2 + $0x8] sm:$0xff] }
  0xea   : > { %v475_v56 = vld [vmem:[#allocation2 + $0x28] sm:$0xff]  ;;  %832 = vpow2.f32 %v754_v49  ;;  %v752_v57 = vmul.f32 -1.442695, %v500_v51  ;;  %v486_v59 = vmul.f32 %v750_v35, %v471_v55  ;;  %v503_v60 = vadd.f32 %v751_v37, %v488_v53 }
  0xeb   : > { %v756_v58 = vmul.f32 -1.442695, %v504_v52  ;;  %834 = vpow2.f32 %v758_v50  ;;  %v507_v61 = vadd.f32 %v751_v37, %v492_v54  ;;  %v490_v62 = vmul.f32 %v750_v35, %v475_v56 }
  0xec   : > { %836 = vpow2.f32 %v752_v57  ;;  %v501_v63 = vadd.f32 %v751_v37, %v486_v59  ;;  %v755_v0 = vmul.f32 -1.442695, %v503_v60 }
  0xed   : > { %838 = vpow2.f32 %v756_v58  ;;  %v759_v1 = vmul.f32 -1.442695, %v507_v61  ;;  %v505_v2 = vadd.f32 %v751_v37, %v490_v62 }
  0xee   : > { %v753_v3 = vmul.f32 -1.442695, %v501_v63  ;;  %840 = vpow2.f32 %v755_v0 }
  0xef   : > { %v757_v4 = vmul.f32 -1.442695, %v505_v2  ;;  %842 = vpow2.f32 %v759_v1 }
  0xf0   : > { %844 = vpow2.f32 %v753_v3 }
  0xf1   : > { %846 = vpow2.f32 %v757_v4 }
  0xf7   : > { %v833_v5 = vpop.eup %832 }
  0xf8   : > { %v835_v6 = vpop.eup %834  ;;  %v534_v7 = vadd.f32 1.0, %v833_v5 }
  0xf9   : > { %v837_v8 = vpop.eup %836  ;;  %v538_v9 = vadd.f32 1.0, %v835_v6 }
  0xfa   : > { %v839_v10 = vpop.eup %838  ;;  %848 = vrcp.f32 %v534_v7  ;;  %v532_v11 = vadd.f32 1.0, %v837_v8 }
  0xfb   : > { %850 = vrcp.f32 %v538_v9  ;;  %v536_v12 = vadd.f32 1.0, %v839_v10  ;;  %v841_v13 = vpop.eup %840 }
  0xfc   : > { %852 = vrcp.f32 %v532_v11  ;;  %v843_v14 = vpop.eup %842  ;;  %v535_v15 = vadd.f32 1.0, %v841_v13 }
  0xfd   : > { %854 = vrcp.f32 %v536_v12  ;;  %v845_v16 = vpop.eup %844  ;;  %v539_v17 = vadd.f32 1.0, %v843_v14 }
  0xfe   : > { %v847_v18 = vpop.eup %846  ;;  %856 = vrcp.f32 %v535_v15  ;;  %v533_v19 = vadd.f32 1.0, %v845_v16 }
  0xff   : > { %858 = vrcp.f32 %v539_v17  ;;  %v537_v20 = vadd.f32 1.0, %v847_v18 }
 0x100   : > { %860 = vrcp.f32 %v533_v19 }
 0x101   : > { %862 = vrcp.f32 %v537_v20 }
 0x107   : > { %v849_v21 = vpop.eup %848 }
 0x108   : > { %v851_v22 = vpop.eup %850  ;;  %v558_v23 = vmul.f32 %v849_v21, %v502_v43 }
 0x109   : > { %v853_v24 = vpop.eup %852  ;;  %v562_v25 = vmul.f32 %v851_v22, %v972_v44 }
 0x10a   : > { %v855_v26 = vpop.eup %854  ;;  %v772_v27 = vpack.c.bf16 %v558_v23, %v558_v23  ;;  %v556_v28 = vmul.f32 %v853_v24, %v500_v51 }
 0x10b   : > { %v776_v29 = vpack.c.bf16 %v562_v25, %v562_v25  ;;  %v560_v30 = vmul.f32 %v855_v26, %v504_v52  ;;  %v857_v31 = vpop.eup %856 }
 0x10c   : > { %599 = vst.msk [vmem:[%s298_s8 + $0x8] sm:$0xf] %vm596_vm4, %v772_v27  ;;  %v770_v32 = vpack.c.bf16 %v556_v28, %v556_v28  ;;  %v859_v33 = vpop.eup %858  ;;  %v559_v35 = vmul.f32 %v857_v31, %v503_v60 }
 0x10d   : > { %603 = vst.msk [vmem:[%s298_s8 + $0x18] sm:$0xf] %vm596_vm4, %v776_v29  ;;  %v774_v34 = vpack.c.bf16 %v560_v30, %v560_v30  ;;  %v861_v36 = vpop.eup %860  ;;  %v563_v37 = vmul.f32 %v859_v33, %v507_v61 }
 0x10e   : > { %597 = vst.msk [vmem:[%s298_s8] sm:$0xf] %vm596_vm4, %v770_v32  ;;  %v863_v38 = vpop.eup %862  ;;  %v773_v39 = vpack.c.bf16 %v559_v35, %v559_v35  ;;  %v557_v40 = vmul.f32 %v861_v36, %v501_v63 }
 0x10f   : > { %601 = vst.msk [vmem:[%s298_s8 + $0x10] sm:$0xf] %vm596_vm4, %v774_v34  ;;  %v777_v41 = vpack.c.bf16 %v563_v37, %v563_v37  ;;  %v561_v42 = vmul.f32 %v863_v38, %v505_v2 }
 0x110   : > { %600 = vst.msk [vmem:[%s298_s8 + $0xc] sm:$0xf] %vm596_vm4, %v773_v39  ;;  %v771_v43 = vpack.c.bf16 %v557_v40, %v557_v40 }
 0x111   : > { %604 = vst.msk [vmem:[%s298_s8 + $0x1c] sm:$0xf] %vm596_vm4, %v777_v41  ;;  %v775_v44 = vpack.c.bf16 %v561_v42, %v561_v42 }
 0x112   : > { %598 = vst.msk [vmem:[%s298_s8 + $0x4] sm:$0xf] %vm596_vm4, %v771_v43 }
 0x113   : > { %602 = vst.msk [vmem:[%s298_s8 + $0x14] sm:$0xf] %vm596_vm4, %v775_v44 }
 0x114 PF: > { %s14_s17 = sadd.s32 1, %s886_s17   ;;  %s1003_s15 = smov %s882_s16 }
 0x115   : > { %p11_p5 = scmp.ge.s32.totalorder %s14_s17, 4   ;;  %s1004_s16 = smov %s1006_s18 }
 0x117   :  { %13 = sbr.rel (!%p11_p5) target bundleno = 2 (0x2), region = 83 }

</bundles_post_ra>
